<compile_context>
chip_gen: v7x
topology: tpu7x:2x2x1
jax: 0.10.0
libtpu: 0.0.40
codegen_flags: <defaults>
</compile_context>

<pallas_src>
import functools

import jax
import jax.numpy as jnp
from jax import lax
from jax.experimental import pallas as pl
from jax.experimental.pallas import tpu as pltpu

BN_EPS = 1e-5
LANE = 128


def _round_up(n, m=8):
    return ((n + m - 1) // m) * m


def _critic_kernel(state_ref, action_ref, w_ref, vec_ref, o_ref, *,
                   state_dim, action_dim, w1s_off, w1a_off, w2_off, w3_off,
                   lane):
    state = state_ref[...]                       # (B, state_dim)
    action = action_ref[...]                     # (B, action_dim)

    # Static, 8-row-aligned slices into the packed weight slab.
    w1s = w_ref[w1s_off:w1s_off + state_dim, :]  # (state_dim, lane)
    w1a = w_ref[w1a_off:w1a_off + action_dim, :] # (action_dim, lane)
    w2 = w_ref[w2_off:w2_off + lane, :]          # (lane, lane), zero-padded
    w3 = w_ref[w3_off:w3_off + lane, :]          # (lane, lane), zero-padded

    vecs = vec_ref[...]                          # (8, lane)
    b1 = vecs[0:1, :]
    gamma = vecs[1:2, :]
    beta = vecs[2:3, :]
    b2 = vecs[3:4, :]
    b3 = vecs[4:5, :]

    # fc1 split across state/action (replaces the host-side concat) + ReLU.
    h1 = (jnp.dot(state, w1s, preferred_element_type=jnp.float32)
          + jnp.dot(action, w1a, preferred_element_type=jnp.float32)
          + b1)
    h1 = jnp.maximum(h1, 0.0)                    # (B, lane); padded lanes = 0

    # BatchNorm1d (training stats, biased var) folded to one affine.
    # Single-pass var => the two sublane reductions are independent.
    mean = jnp.mean(h1, axis=0, keepdims=True)
    mean_sq = jnp.mean(h1 * h1, axis=0, keepdims=True)
    var = jnp.maximum(mean_sq - mean * mean, 0.0)
    scale = gamma * lax.rsqrt(var + BN_EPS)
    shift = beta - mean * scale
    y = h1 * scale + shift                       # padded lanes stay 0 (gamma=beta=0)

    # fc2 + ReLU
    h2 = jnp.maximum(jnp.dot(y, w2, preferred_element_type=jnp.float32) + b2, 0.0)

    # fc3 — lane-dense (B, lane) output; real result lives in lane 0..out_dim.
    o_ref[...] = jnp.dot(h2, w3, preferred_element_type=jnp.float32) + b3


def pack_params(params, state_dim, action_dim, lane=LANE):
    """Pack the 9 parameter arrays into 2 buffers (done ONCE, not per call)."""
    fc1 = params["w1"].shape[1]
    fc2 = params["w2"].shape[1]
    out_dim = params["w3"].shape[1]
    assert fc1 <= lane and fc2 <= lane and out_dim <= lane

    w1 = params["w1"]                       # (state_dim + action_dim, fc1)
    w1s = w1[:state_dim]
    w1a = w1[state_dim:]

    w1s_off = 0
    w1a_off = _round_up(state_dim)
    w2_off = w1a_off + _round_up(action_dim)
    w3_off = w2_off + lane
    total_rows = w3_off + lane              # multiple of 8 by construction

    w_slab = jnp.zeros((total_rows, lane), jnp.float32)
    w_slab = w_slab.at[w1s_off:w1s_off + state_dim, :fc1].set(w1s)
    w_slab = w_slab.at[w1a_off:w1a_off + action_dim, :fc1].set(w1a)
    w_slab = w_slab.at[w2_off:w2_off + fc1, :fc2].set(params["w2"])
    w_slab = w_slab.at[w3_off:w3_off + fc2, :out_dim].set(params["w3"])

    vec_slab = jnp.zeros((8, lane), jnp.float32)
    vec_slab = vec_slab.at[0, :fc1].set(params["b1"][0])
    vec_slab = vec_slab.at[1, :fc1].set(params["gamma"][0])
    vec_slab = vec_slab.at[2, :fc1].set(params["beta"][0])
    vec_slab = vec_slab.at[3, :fc2].set(params["b2"][0])
    vec_slab = vec_slab.at[4, :out_dim].set(params["b3"][0])

    return {
        "w_slab": w_slab, "vec_slab": vec_slab,
        "state_dim": state_dim, "action_dim": action_dim,
        "w1s_off": w1s_off, "w1a_off": w1a_off,
        "w2_off": w2_off, "w3_off": w3_off,
        "lane": lane, "out_dim": out_dim,
    }


def critic_forward(state, action, packed):
    """Run the Critic forward pass as one Pallas kernel.

    state:  (B, state_dim) f32
    action: (B, action_dim) f32
    packed: output of pack_params()
    """
    B = state.shape[0]
    lane = packed["lane"]

    kernel = functools.partial(
        _critic_kernel,
        state_dim=packed["state_dim"], action_dim=packed["action_dim"],
        w1s_off=packed["w1s_off"], w1a_off=packed["w1a_off"],
        w2_off=packed["w2_off"], w3_off=packed["w3_off"],
        lane=lane)

    vmem = pl.BlockSpec(memory_space=pltpu.MemorySpace.VMEM)

    out_padded = pl.pallas_call(
        kernel,
        out_shape=jax.ShapeDtypeStruct((B, lane), jnp.float32),
        in_specs=[vmem, vmem, vmem, vmem],
        out_specs=vmem,
    )(state.astype(jnp.float32), action.astype(jnp.float32),
      packed["w_slab"], packed["vec_slab"])

    # Lane-dense kernel store; trim to the real output width here.
    return out_padded[:, :packed["out_dim"]]


def init_params(key, input_size, output_size, fc1_units=64, fc2_units=64):
    """Deterministic init mirroring the PyTorch module's reset_parameters()."""
    k1, k2, k3, k4, k5, k6 = jax.random.split(key, 6)

    # hidden_init uses weight.size()[0] == out_features for nn.Linear
    lim1 = 1.0 / jnp.sqrt(jnp.float32(fc1_units))
    lim2 = 1.0 / jnp.sqrt(jnp.float32(fc2_units))
    lim3 = 0.003

    # default nn.Linear bias init: U(-1/sqrt(in_features), 1/sqrt(in_features))
    blim1 = 1.0 / jnp.sqrt(jnp.float32(input_size))
    blim2 = 1.0 / jnp.sqrt(jnp.float32(fc1_units))
    blim3 = 1.0 / jnp.sqrt(jnp.float32(fc2_units))

    return {
        # weights stored as (in, out) so the kernel does x @ W
        "w1": jax.random.uniform(k1, (input_size, fc1_units), jnp.float32, -lim1, lim1),
        "b1": jax.random.uniform(k2, (1, fc1_units), jnp.float32, -blim1, blim1),
        "gamma": jnp.ones((1, fc1_units), jnp.float32),   # BatchNorm1d weight
        "beta": jnp.zeros((1, fc1_units), jnp.float32),   # BatchNorm1d bias
        "w2": jax.random.uniform(k3, (fc1_units, fc2_units), jnp.float32, -lim2, lim2),
        "b2": jax.random.uniform(k4, (1, fc2_units), jnp.float32, -blim2, blim2),
        "w3": jax.random.uniform(k5, (fc2_units, output_size), jnp.float32, -lim3, lim3),
        "b3": jax.random.uniform(k6, (1, output_size), jnp.float32, -blim3, blim3),
    }


def critic_reference(state, action, params):
    """Pure-JAX reference of the same forward pass (for correctness check)."""
    x = jnp.concatenate([state, action], axis=1)
    h1 = jnp.maximum(x @ params["w1"] + params["b1"], 0.0)
    mean = jnp.mean(h1, axis=0, keepdims=True)
    var = jnp.mean((h1 - mean) ** 2, axis=0, keepdims=True)
    y = params["gamma"] * (h1 - mean) / jnp.sqrt(var + BN_EPS) + params["beta"]
    h2 = jnp.maximum(y @ params["w2"] + params["b2"], 0.0)
    return h2 @ params["w3"] + params["b3"]


if __name__ == "__main__":
    # Small shapes consistent with the module: Critic(input_size=16, output_size=1)
    # where input_size = state_dim + action_dim.
    batch = 8
    state_dim, action_dim = 12, 4
    input_size = state_dim + action_dim
    output_size = 1

    key = jax.random.PRNGKey(0)
    kp, ks, ka = jax.random.split(key, 3)

    params = init_params(kp, input_size, output_size, fc1_units=64, fc2_units=64)
    packed = pack_params(params, state_dim, action_dim)   # done once, not per call

    state = jax.random.normal(ks, (batch, state_dim), jnp.float32)
    action = jax.random.normal(ka, (batch, action_dim), jnp.float32)

    out = critic_forward(state, action, packed)
    out = jax.block_until_ready(out)

    ref = critic_reference(state, action, params)
    assert out.shape == (batch, output_size)
    assert jnp.allclose(out, ref, atol=1e-4, rtol=1e-4), "mismatch vs reference"

    print("KERNEL_OK")
</pallas_src>

<mosaic_0001>
module attributes {stable_mosaic.version = 11 : i64} {
  func.func @_critic_kernel(%arg0: memref<8x12xf32, #tpu.memory_space<vmem>>, %arg1: memref<8x4xf32, #tpu.memory_space<vmem>>, %arg2: memref<280x128xf32, #tpu.memory_space<vmem>>, %arg3: memref<8x128xf32, #tpu.memory_space<vmem>>, %arg4: memref<8x128xf32, #tpu.memory_space<vmem>>) attributes {dimension_semantics = [], scalar_prefetch = 0 : i64, scratch_operands = 0 : i64, tpu.core_type = #tpu.core_type<tc>} {
    %c0 = arith.constant 0 : index
    %c0_0 = arith.constant 0 : index
    %0 = vector.load %arg0[%c0, %c0_0] : memref<8x12xf32, #tpu.memory_space<vmem>>, vector<8x12xf32>
    %c0_1 = arith.constant 0 : index
    %c0_2 = arith.constant 0 : index
    %1 = vector.load %arg1[%c0_1, %c0_2] : memref<8x4xf32, #tpu.memory_space<vmem>>, vector<8x4xf32>
    %c0_3 = arith.constant 0 : index
    %c0_4 = arith.constant 0 : index
    %2 = vector.load %arg2[%c0_3, %c0_4] : memref<280x128xf32, #tpu.memory_space<vmem>>, vector<12x128xf32>
    %c16 = arith.constant 16 : index
    %c0_5 = arith.constant 0 : index
    %3 = vector.load %arg2[%c16, %c0_5] : memref<280x128xf32, #tpu.memory_space<vmem>>, vector<4x128xf32>
    %c24 = arith.constant 24 : index
    %c0_6 = arith.constant 0 : index
    %4 = vector.load %arg2[%c24, %c0_6] : memref<280x128xf32, #tpu.memory_space<vmem>>, vector<128x128xf32>
    %c152 = arith.constant 152 : index
    %c0_7 = arith.constant 0 : index
    %5 = vector.load %arg2[%c152, %c0_7] : memref<280x128xf32, #tpu.memory_space<vmem>>, vector<128x128xf32>
    %c0_8 = arith.constant 0 : index
    %c0_9 = arith.constant 0 : index
    %6 = vector.load %arg3[%c0_8, %c0_9] : memref<8x128xf32, #tpu.memory_space<vmem>>, vector<8x128xf32>
    %7 = vector.extract_strided_slice %6 {offsets = [0, 0], sizes = [1, 128], strides = [1, 1]} : vector<8x128xf32> to vector<1x128xf32>
    %8 = vector.extract_strided_slice %6 {offsets = [1, 0], sizes = [1, 128], strides = [1, 1]} : vector<8x128xf32> to vector<1x128xf32>
    %9 = vector.extract_strided_slice %6 {offsets = [2, 0], sizes = [1, 128], strides = [1, 1]} : vector<8x128xf32> to vector<1x128xf32>
    %10 = vector.extract_strided_slice %6 {offsets = [3, 0], sizes = [1, 128], strides = [1, 1]} : vector<8x128xf32> to vector<1x128xf32>
    %11 = vector.extract_strided_slice %6 {offsets = [4, 0], sizes = [1, 128], strides = [1, 1]} : vector<8x128xf32> to vector<1x128xf32>
    %cst = arith.constant dense<0.000000e+00> : vector<8x128xf32>
    %12 = tpu.matmul %0, %2, %cst {dimension_numbers = #tpu.dot_dimension_numbers<[1], [0], [0], [1], [0, 0, 1, 1], [], []>} : vector<8x12xf32>, vector<12x128xf32>, vector<8x128xf32> -> vector<8x128xf32>
    %cst_10 = arith.constant dense<0.000000e+00> : vector<8x128xf32>
    %13 = tpu.matmul %1, %3, %cst_10 {dimension_numbers = #tpu.dot_dimension_numbers<[1], [0], [0], [1], [0, 0, 1, 1], [], []>} : vector<8x4xf32>, vector<4x128xf32>, vector<8x128xf32> -> vector<8x128xf32>
    %14 = arith.addf %12, %13 : vector<8x128xf32>
    %15 = vector.broadcast %7 : vector<1x128xf32> to vector<8x128xf32>
    %16 = arith.addf %14, %15 : vector<8x128xf32>
    %cst_11 = arith.constant 0.000000e+00 : f32
    %17 = vector.broadcast %cst_11 : f32 to vector<8x128xf32>
    %18 = arith.maximumf %16, %17 : vector<8x128xf32>
    %cst_12 = arith.constant dense<0.000000e+00> : vector<128xf32>
    %19 = vector.multi_reduction <add>, %18, %cst_12 [0] : vector<8x128xf32> to vector<128xf32>
    %20 = vector.shape_cast %19 : vector<128xf32> to vector<1x128xf32>
    %cst_13 = arith.constant 8.000000e+00 : f32
    %21 = vector.broadcast %cst_13 : f32 to vector<1x128xf32>
    %22 = arith.divf %20, %21 : vector<1x128xf32>
    %23 = arith.mulf %18, %18 : vector<8x128xf32>
    %cst_14 = arith.constant dense<0.000000e+00> : vector<128xf32>
    %24 = vector.multi_reduction <add>, %23, %cst_14 [0] : vector<8x128xf32> to vector<128xf32>
    %25 = vector.shape_cast %24 : vector<128xf32> to vector<1x128xf32>
    %cst_15 = arith.constant 8.000000e+00 : f32
    %26 = vector.broadcast %cst_15 : f32 to vector<1x128xf32>
    %27 = arith.divf %25, %26 : vector<1x128xf32>
    %28 = arith.mulf %22, %22 : vector<1x128xf32>
    %29 = arith.subf %27, %28 : vector<1x128xf32>
    %cst_16 = arith.constant 0.000000e+00 : f32
    %30 = vector.broadcast %cst_16 : f32 to vector<1x128xf32>
    %31 = arith.maximumf %29, %30 : vector<1x128xf32>
    %cst_17 = arith.constant 9.99999974E-6 : f32
    %32 = vector.broadcast %cst_17 : f32 to vector<1x128xf32>
    %33 = arith.addf %31, %32 : vector<1x128xf32>
    %34 = math.rsqrt %33 : vector<1x128xf32>
    %35 = arith.mulf %8, %34 : vector<1x128xf32>
    %36 = arith.mulf %22, %35 : vector<1x128xf32>
    %37 = arith.subf %9, %36 : vector<1x128xf32>
    %38 = vector.broadcast %35 : vector<1x128xf32> to vector<8x128xf32>
    %39 = arith.mulf %18, %38 : vector<8x128xf32>
    %40 = vector.broadcast %37 : vector<1x128xf32> to vector<8x128xf32>
    %41 = arith.addf %39, %40 : vector<8x128xf32>
    %cst_18 = arith.constant dense<0.000000e+00> : vector<8x128xf32>
    %42 = tpu.matmul %41, %4, %cst_18 {dimension_numbers = #tpu.dot_dimension_numbers<[1], [0], [0], [1], [0, 0, 1, 1], [], []>} : vector<8x128xf32>, vector<128x128xf32>, vector<8x128xf32> -> vector<8x128xf32>
    %43 = vector.broadcast %10 : vector<1x128xf32> to vector<8x128xf32>
    %44 = arith.addf %42, %43 : vector<8x128xf32>
    %cst_19 = arith.constant 0.000000e+00 : f32
    %45 = vector.broadcast %cst_19 : f32 to vector<8x128xf32>
    %46 = arith.maximumf %44, %45 : vector<8x128xf32>
    %cst_20 = arith.constant dense<0.000000e+00> : vector<8x128xf32>
    %47 = tpu.matmul %46, %5, %cst_20 {dimension_numbers = #tpu.dot_dimension_numbers<[1], [0], [0], [1], [0, 0, 1, 1], [], []>} : vector<8x128xf32>, vector<128x128xf32>, vector<8x128xf32> -> vector<8x128xf32>
    %48 = vector.broadcast %11 : vector<1x128xf32> to vector<8x128xf32>
    %49 = arith.addf %47, %48 : vector<8x128xf32>
    %c0_21 = arith.constant 0 : index
    %c0_22 = arith.constant 0 : index
    %50 = vector.load %arg4[%c0_21, %c0_22] : memref<8x128xf32, #tpu.memory_space<vmem>>, vector<8x128xf32>
    tpu.vector_store %arg4[%c0_21, %c0_22], %49 {strides = array<i32>} : memref<8x128xf32, #tpu.memory_space<vmem>>, vector<8x128xf32>,
    return
  }
}

</mosaic_0001>

<bundles_post_ra>
// kernel: tpu_custom_call.1
= control target key start
LH: loop header
LB: loop body
LE: loop exit
PB: predicated region body
PF: predicated region fallthrough
CT: control target
= control target key end

     0   :  { %9 = vsyncpa [#allocation3], 0  ;;  %s755_s0 = inlined_call_operand.vmem [shape: f32[8,12], index: 0, kind: input, shape index: {}]   ;;  %s756_s1 = inlined_call_operand.vmem [shape: f32[8,4], index: 1, kind: input, shape index: {}]   ;;  %s757_s2 = inlined_call_operand.hbm [shape: f32[280,128], index: 2, kind: input, shape index: {}]   ;;  %s758_s3 = inlined_call_operand.vmem [shape: f32[8,128], index: 3, kind: input, shape index: {}]   ;;  %s759_s4 = inlined_call_operand.hbm [shape: f32[8,128], index: 4, kind: output, shape index: {}]  }
   0x1   :  { %10 = vsyncpa [#allocation4], 0  ;;  %s668_s15 = smov [#allocation2]   ;;  %s620_s19 = scalar_lea.hbm %s757_s2, 4480 }
   0x2   :  { %s20_s16 = sshll.u32 %s668_s15, 4  ;;  %p621_p0 = scmp.ne.s32.totalorder %s757_s2, %s620_s19  ;;  %s21_s16 = int_to_ptr.vmem [resolvable:$true] %s20_s16 }
   0x3   :  { %p624_p1 = scmp.lt.u32.totalorder %s620_s19, %s757_s2 }
   0x5   :  { %p626_p2 = pnand %p624_p1, %p621_p0 }
   0x7   :  { %629 = shalt.err (!%p626_p2)
}
   0x8   :  { %s630_s24 = scalar_lea.vmem %s21_s16, 4480  ;;  %p635_p4 = scmp.lt.s32.totalorder %s21_s16, %s21_s16 }
   0x9   :  { %p631_p3 = scmp.ne.s32.totalorder %s21_s16, %s630_s24  ;;  %p636_p5 = scmp.lt.s32.totalorder %s630_s24, %s630_s24 }
   0xb   :  { %p637_p6 = por %p636_p5, %p635_p4 }
   0xd   :  { %p638_p7 = pnand %p637_p6, %p631_p3 }
   0xf   :  { %641 = shalt.err (!%p638_p7)
}
  0x10   :  { %s669_s25 = smov 128   ;;  %s670_s26 = smov 8  }
  0x11   :  { %26 = dma.hbm_to_vmem [thread:$0]  %s757_s2, 4480, %s21_s16, [#allocation3], %s669_s25, %s669_s25, %s670_s26  }
  0x12   :  { %664 = dma.done.wait [#allocation3], 4480  }
  0x13   :  { %665 = vsyncadd [#allocation3], 4294962816  ;;  %v671_v0 = vmov 0.0|0.0   ;;  %v672_v1 = vmov 0.0   ;;  %vm673_vm0 = vmmov 0   ;;  %vm74_vm1 = vcmask 1043456  }
  0x14   :  { %558 = vmatprep.subr.bf16.mxu1 %v671_v0  ;;  %476 = vmatprep.subr.mxu0 %v672_v1  ;;  %vm674_vm2 = vmmov 1   ;;  %vm70_vm4 = vcmask 31744   ;;  %v34_v2 = vld [vmem:[#allocation2] sm:$0xff]  ;;  %v35_v3 = vld [vmem:[#allocation2 + $0x8] sm:$0xf]  ;;  %vm148_vm5 = vcmask 97280   ;;  %v225_v53 = vlaneseq }
  0x15   :  { %478 = vmatprep.mubr.msk.f32.mxu0 %vm673_vm0, %v672_v1  ;;  %485 = vmatprep.mubr.msk.f32.mxu1 %vm673_vm0, %v672_v1  ;;  %vm560_vm3 = vmpackc.low %vm74_vm1, %vm674_vm2  ;;  %v36_v4 = vld [vmem:[#allocation2 + $0x10] sm:$0xf]  ;;  %v559_v5 = vpack.c.bf16 %v35_v3, %v34_v2  ;;  %v33_v6 = vld [vmem:[%s756_s1] sm:$0xff] }
  0x16   :  { %477 = vmatpush3.msk.msra.mxu0 %vm74_vm1, %v36_v4  ;;  %v32_v7 = vld [vmem:[%s755_s0] sm:$0xff]  ;;  %v37_v8 = vld [vmem:[#allocation2 + $0x18] sm:$0xff]  ;;  %v39_v11 = vld [vmem:[#allocation2 + $0x28] sm:$0xff]  ;;  %v226_v54 = vshrl.u32 %v225_v53, 7 }
  0x17   :  { %479 = vmatmul.mubr.msk.f32.vlgmr.msra.gmra.mrb[0].mxu0 %vm70_vm4, %v33_v6  ;;  %562 = vmatprep.subr.bf16.mxu0 %v671_v0  ;;  %v38_v9 = vld [vmem:[#allocation2 + $0x20] sm:$0xff]  ;;  %v40_v12 = vld [vmem:[#allocation2 + $0x30] sm:$0xff]  ;;  %v41_v14 = vld [vmem:[#allocation2 + $0x38] sm:$0xff] }
  0x18   :  { %561 = vmatpush3.bf16.msk.msra.mxu1 %vm560_vm3, %v559_v5  ;;  %520 = vmatprep.mubr.msk.f32.mxu0 %vm673_vm0, %v672_v1  ;;  %v563_v10 = vpack.c.bf16 %v38_v9, %v37_v8  ;;  %v566_v13 = vpack.c.bf16 %v40_v12, %v39_v11  ;;  %v42_v15 = vld [vmem:[#allocation2 + $0x40] sm:$0xff]  ;;  %v43_v17 = vld [vmem:[#allocation2 + $0x48] sm:$0xff]  ;;  %v44_v18 = vld [vmem:[#allocation2 + $0x50] sm:$0xff]  ;;  %v227_v55 = vsub.s32 0, %v226_v54 }
  0x19   :  { %586 = vmatprep.subr.bf16.mxu1 %v671_v0  ;;  %v569_v16 = vpack.c.bf16 %v42_v15, %v41_v14  ;;  %v572_v19 = vpack.c.bf16 %v44_v18, %v43_v17  ;;  %v45_v20 = vld [vmem:[#allocation2 + $0x58] sm:$0xff]  ;;  %v46_v21 = vld [vmem:[#allocation2 + $0x60] sm:$0xff]  ;;  %v47_v23 = vld [vmem:[#allocation2 + $0x68] sm:$0xff] }
  0x1a   :  { %564 = vmatpush3.bf16.msra.mxu0 %v563_v10  ;;  %v575_v22 = vpack.c.bf16 %v46_v21, %v45_v20  ;;  %v48_v24 = vld [vmem:[#allocation2 + $0x70] sm:$0xff]  ;;  %v49_v26 = vld [vmem:[#allocation2 + $0x78] sm:$0xff]  ;;  %v50_v27 = vld [vmem:[#allocation2 + $0x80] sm:$0xff] }
  0x1b   :  { %486 = vmatmul.mubr.msk.f32.vlgmr.msra.gmra.mrb[0].mxu1 %vm148_vm5, %v32_v7  ;;  %565 = vmatprep.subr.bf16.mxu0 %v671_v0  ;;  %v578_v25 = vpack.c.bf16 %v48_v24, %v47_v23  ;;  %v581_v28 = vpack.c.bf16 %v50_v27, %v49_v26  ;;  %v51_v29 = vld [vmem:[#allocation2 + $0x88] sm:$0xff]  ;;  %v52_v30 = vld [vmem:[#allocation2 + $0x90] sm:$0xff]  ;;  %v53_v32 = vld [vmem:[#allocation2 + $0x98] sm:$0xff]  ;;  %v265_v26 = vsub.s32 2, %v226_v54 }
  0x1c   :  { %555 = vmatprep.mubr.msk.f32.mxu1 %vm673_vm0, %v672_v1  ;;  %v584_v31 = vpack.c.bf16 %v52_v30, %v51_v29  ;;  %v54_v33 = vld [vmem:[#allocation2 + $0xa0] sm:$0xff]  ;;  %v55_v34 = vld [vmem:[#allocation2 + $0xa8] sm:$0xff]  ;;  %v56_v36 = vld [vmem:[#allocation2 + $0xb0] sm:$0xff] }
  0x1d   :  { %v587_v35 = vpack.c.bf16 %v54_v33, %v53_v32  ;;  %v590_v37 = vpack.c.bf16 %v56_v36, %v55_v34  ;;  %v57_v38 = vld [vmem:[#allocation2 + $0xb8] sm:$0xff]  ;;  %v58_v39 = vld [vmem:[#allocation2 + $0xc0] sm:$0xff]  ;;  %v59_v41 = vld [vmem:[#allocation2 + $0xc8] sm:$0xff]  ;;  %v270_v34 = vsub.s32 3, %v226_v54 }
  0x1e   :  { %567 = vmatpush3.bf16.msra.mxu0 %v566_v13  ;;  %v593_v40 = vpack.c.bf16 %v58_v39, %v57_v38  ;;  %v60_v42 = vld [vmem:[#allocation2 + $0xd0] sm:$0xff]  ;;  %v61_v44 = vld [vmem:[#allocation2 + $0xd8] sm:$0xff]  ;;  %v62_v45 = vld [vmem:[#allocation2 + $0xe0] sm:$0xff] }
  0x1f   :  { %568 = vmatprep.subr.bf16.mxu0 %v671_v0  ;;  %588 = vmatpush3.bf16.msra.mxu1 %v587_v35  ;;  %v596_v43 = vpack.c.bf16 %v60_v42, %v59_v41  ;;  %v599_v46 = vpack.c.bf16 %v62_v45, %v61_v44  ;;  %v63_v47 = vld [vmem:[#allocation2 + $0xe8] sm:$0xff]  ;;  %v64_v48 = vld [vmem:[#allocation2 + $0xf0] sm:$0xff]  ;;  %v65_v50 = vld [vmem:[#allocation2 + $0xf8] sm:$0xff] }
  0x20   :  { %589 = vmatprep.subr.bf16.mxu1 %v671_v0  ;;  %v602_v49 = vpack.c.bf16 %v64_v48, %v63_v47  ;;  %v66_v51 = vld [vmem:[#allocation2 + $0x100] sm:$0xff]  ;;  %v68_v32 = vld [vmem:[#allocation2 + $0x110] sm:$0xff] }
  0x21   :  { %v605_v52 = vpack.c.bf16 %v66_v51, %v65_v50  ;;  %v69_v57 = vld [vmem:[%s758_s3] sm:$0xff]  ;;  %s675_s3 = smov [#allocation5]  }
  0x22   :  { %570 = vmatpush3.bf16.msra.mxu0 %v569_v16  ;;  %v228_v59 = vrot.slane %v69_v57, %v227_v55  ;;  %v271_v35 = vrot.slane %v69_v57, %v270_v34  ;;  %s424_s6 = sshll.u32 %s675_s3, 4  ;;  %s425_s6 = int_to_ptr.vmem [resolvable:$true] %s424_s6 }
  0x23   :  { %571 = vmatprep.subr.bf16.mxu0 %v671_v0  ;;  %591 = vmatpush3.bf16.msra.mxu1 %v590_v37  ;;  %s642_s7 = scalar_lea.vmem %s425_s6, 128  ;;  %p647_p9 = scmp.lt.s32.totalorder %s425_s6, %s425_s6 }
  0x24   :  { %592 = vmatprep.subr.bf16.mxu1 %v671_v0  ;;  %p643_p8 = scmp.ne.s32.totalorder %s425_s6, %s642_s7  ;;  %p648_p10 = scmp.lt.s32.totalorder %s642_s7, %s642_s7 }
  0x26   :  { %573 = vmatpush3.bf16.msra.mxu0 %v572_v19  ;;  %p649_p11 = por %p648_p10, %p647_p9 }
  0x27   :  { %574 = vmatprep.subr.bf16.mxu0 %v671_v0  ;;  %594 = vmatpush3.bf16.msra.mxu1 %v593_v40  ;;  %v345_v40 = vsub.s32 4, %v226_v54 }
  0x28   :  { %595 = vmatprep.subr.bf16.mxu1 %v671_v0  ;;  %p650_p12 = pnand %p649_p11, %p643_p8 }
  0x29   :  { %v346_v41 = vrot.slane %v69_v57, %v345_v40 }
  0x2a   :  { %576 = vmatpush3.bf16.msra.mxu0 %v575_v22  ;;  %v260_v22 = vsub.s32 1, %v226_v54 }
  0x2b   :  { %577 = vmatprep.subr.bf16.mxu0 %v671_v0  ;;  %597 = vmatpush3.bf16.msra.mxu1 %v596_v43 }
  0x2c   :  { %598 = vmatprep.subr.bf16.mxu1 %v671_v0 }
  0x2e   :  { %579 = vmatpush3.bf16.msra.mxu0 %v578_v25 }
  0x2f   :  { %580 = vmatprep.subr.bf16.mxu0 %v671_v0  ;;  %600 = vmatpush3.bf16.msra.mxu1 %v599_v46 }
  0x30   :  { %601 = vmatprep.subr.bf16.mxu1 %v671_v0 }
  0x32   :  { %582 = vmatpush3.bf16.msra.mxu0 %v581_v28 }
  0x33   :  { %583 = vmatprep.subr.bf16.mxu0 %v671_v0  ;;  %603 = vmatpush3.bf16.msra.mxu1 %v602_v49 }
  0x34   :  { %604 = vmatprep.subr.bf16.mxu1 %v671_v0 }
  0x36   :  { %585 = vmatpush3.bf16.msra.mxu0 %v584_v31  ;;  %v67_v31 = vld [vmem:[#allocation2 + $0x108] sm:$0xff] }
  0x37   :  { %606 = vmatpush3.bf16.msra.mxu1 %v605_v52  ;;  %v608_v33 = vpack.c.bf16 %v68_v32, %v67_v31 }
  0x38   :  { %607 = vmatprep.subr.bf16.mxu1 %v671_v0 }
  0x3b   :  { %609 = vmatpush3.bf16.msra.mxu1 %v608_v33 }
  0xea   :  { %v144_v56 = vpop.f32.mrb[0].mxu0 }
  0xeb   :  { %v480_v58 = vpop.f32.mrb[1].mxu0 }
  0xee   :  { %v221_v60 = vpop.f32.mrb[0].mxu1 }
  0xef   :  { %v222_v61 = vadd.f32 %v221_v60, %v144_v56  ;;  %v487_v62 = vpop.f32.mrb[1].mxu1 }
  0xf1   :  { %v229_v63 = vadd.f32 %v228_v59, %v222_v61 }
  0xf3   :  { %v230_v1 = vmax.f32 %v229_v63, 0.0 }
  0xf5   :  { %v231_v2 = vrot.slane %v230_v1, 4  ;;  %v239_v3 = vmul.f32 %v230_v1, %v230_v1 }
  0xf7   :  { %v232_v4 = vadd.f32 %v231_v2, %v230_v1  ;;  %v240_v5 = vrot.slane %v239_v3, 4 }
  0xf9   :  { %v233_v0 = vrot.slane %v232_v4, 2  ;;  %v241_v6 = vadd.f32 %v240_v5, %v239_v3 }
  0xfb   :  { %v234_v7 = vadd.f32 %v233_v0, %v232_v4  ;;  %v242_v8 = vrot.slane %v241_v6, 2 }
  0xfd   :  { %v235_v9 = vrot.slane %v234_v7, 1  ;;  %v243_v10 = vadd.f32 %v242_v8, %v241_v6 }
  0xff   :  { %v236_v11 = vadd.f32 %v235_v9, %v234_v7  ;;  %v244_v12 = vrot.slane %v243_v10, 1 }
 0x101   :  { %v238_v13 = vmul.f32 0.125, %v236_v11  ;;  %v245_v14 = vadd.f32 %v244_v12, %v243_v10 }
 0x103   :  { %v246_v15 = vmul.f32 0.125, %v245_v14  ;;  %v247_v16 = vmul.f32 %v238_v13, %v238_v13 }
 0x105   :  { %v248_v17 = vsub.f32 %v246_v15, %v247_v16 }
 0x107   :  { %v249_v18 = vmax.f32 %v248_v17, 0.0 }
 0x109   :  { %v250_v19 = vadd.f32 1e-05, %v249_v18 }
 0x10b   :  { %618 = vrsqrt.f32 %v250_v19 }
 0x115   :  { %v619_v20 = vpop.eup %618 }
 0x116   :  { %v252_v21 = vmul.f32 %v619_v20, %v69_v57 }
 0x118   :  { %v253_v23 = vmul.f32 %v252_v21, %v238_v13  ;;  %v261_v25 = vrot.slane %v252_v21, %v260_v22 }
 0x11a   :  { %v255_v24 = vrot.slane %v253_v23, 7  ;;  %v262_v28 = vmul.f32 %v261_v25, %v230_v1 }
 0x11c   :  { %v257_v27 = vsub.f32 %v69_v57, %v255_v24 }
 0x11e   :  { %v266_v29 = vrot.slane %v257_v27, %v265_v26 }
 0x120   :  { %v267_v30 = vadd.f32 %v266_v29, %v262_v28 }
 0x122   :  { %521 = vmatmul.mubr.f32.vlgmr.msra.gmra.mrb[2].mxu0 %v267_v30 }
 0x1f5   :  { %v338_v36 = vpop.f32.mrb[2].mxu0 }
 0x1f6   :  { %v339_v37 = vadd.f32 %v338_v36, %v271_v35  ;;  %v522_v38 = vpop.f32.mrb[3].mxu0 }
 0x1f8   :  { %v342_v39 = vmax.f32 %v339_v37, 0.0 }
 0x1fa   :  { %556 = vmatmul.mubr.f32.vlgmr.msra.gmra.mrb[2].mxu1 %v342_v39 }
 0x2cd   :  { %v413_v42 = vpop.f32.mrb[2].mxu1 }
 0x2ce   :  { %v414_v43 = vadd.f32 %v413_v42, %v346_v41  ;;  %v557_v44 = vpop.f32.mrb[3].mxu1 }
 0x2d0   :  { %417 = vst [vmem:[#allocation5] sm:$0xff] %v414_v43 }
 0x2d1   :  { %653 = shalt.err (!%p650_p12)
}
 0x2d2   :  { %s654_s10 = scalar_lea.hbm %s759_s4, 128 }
 0x2d3   :  { %p655_p13 = scmp.ne.s32.totalorder %s759_s4, %s654_s10  ;;  %p658_p0 = scmp.lt.u32.totalorder %s654_s10, %s759_s4 }
 0x2d5   :  { %p660_p1 = pnand %p658_p0, %p655_p13 }
 0x2d7   :  { %663 = shalt.err (!%p660_p1)
}
 0x2d8   :  { %427 = dma.vmem_to_hbm [thread:$0]  %s425_s6, 128, %s759_s4, [#allocation4]  }
 0x2d9   :  { %666 = dma.done.wait [#allocation4], 128  }
 0x2da   :  { %667 = vsyncadd [#allocation4], 4294967168 }
 0x2db   :  { %431 = vsyncpa [#allocation3], 1 }
 0x2dc   :  { %432 = vsyncpa [#allocation4], 1 }

</bundles_post_ra>
